<compile_context>
chip_gen: v7x
topology: tpu7x:2x2x1
jax: 0.10.0
libtpu: 0.0.40
codegen_flags: <defaults>
</compile_context>

<pallas_src>
import jax
import jax.numpy as jnp
from jax import lax
from jax.experimental import pallas as pl
from jax.experimental.pallas import tpu as pltpu


def _round_up(x, m):
    return (x + m - 1) // m * m


def _make_kernel(M, TM, mask_m):
    """Build the scorer kernel (closes over static M / TM / masking flag)."""

    def kernel(q_ref, k_ref, o_ref, acc_ref):
        # q_ref:   (TB, 1,  TM)  query slab (resident across seq/feature axes)
        # k_ref:   (TB, TS, TM)  keys slab
        # o_ref:   (TB, 1,  TS)  lane-dense scores slab (resident across k axis)
        # acc_ref: (TB, 1,  TS)  f32 accumulator scratch
        kk = pl.program_id(2)

        @pl.when(kk == 0)
        def _():
            acc_ref[...] = jnp.zeros_like(acc_ref)

        q = q_ref[...]
        kv = k_ref[...]
        if mask_m:
            # Last feature tile is partial; Pallas pads input blocks with
            # undefined data, so select the valid columns (jnp.where is a
            # select -> no NaN propagation from padding garbage).
            colk = kk * TM + lax.broadcasted_iota(jnp.int32, kv.shape, 2)
            colq = kk * TM + lax.broadcasted_iota(jnp.int32, q.shape, 2)
            kv = jnp.where(colk < M, kv, 0)
            q = jnp.where(colq < M, q, 0)

        # MXU contraction over the feature tile, batched over TB, f32 accum.
        acc_ref[...] += lax.dot_general(
            q,                               # (TB, 1, TM)
            kv,                              # (TB, TS, TM)
            dimension_numbers=(((2,), (2,)), ((0,), (0,))),
            preferred_element_type=jnp.float32,
        )                                    # -> (TB, 1, TS)

        @pl.when(kk == pl.num_programs(2) - 1)
        def _():
            o_ref[...] = acc_ref[...].astype(o_ref.dtype)

    return kernel


def _choose_tiles(B, S, M, itemsize, tile_bytes):
    """Pick (TB, TS, TM) so one *padded* keys slab is <= tile_bytes."""
    sublane = max(8, 32 // itemsize)                 # 8 f32 / 16 bf16 / 32 int8 rows
    lane_m = _round_up(M, 128)                       # padded lane count
    row_bytes = lane_m * itemsize                    # one padded keys row in VMEM
    seq_bytes = _round_up(S, sublane) * row_bytes    # one padded (S, M) slab

    # Regime A: even a single 128-row seq tile with the full feature dim blows
    # the budget -> K-tile the feature dim ('arbitrary' axis + accumulator).
    if 128 * row_bytes > tile_bytes:
        ts = S if S <= 128 else 128
        tm = (tile_bytes // (_round_up(ts, sublane) * itemsize)) // 128 * 128
        tm = max(128, tm)
        if tm >= M:
            tm = M
        return 1, ts, tm

    # Regime B: the whole problem fits in one slab.
    if B * seq_bytes <= tile_bytes:
        if B * seq_bytes <= (1 << 20):
            # Tiny problem: one grid step amortizes the fixed per-step cost.
            return B, S, M
        # Medium problem: make >= 2 grid tiles along a parallel axis so
        # v7x's two TensorCores both engage (no-op on v5e/v6e).
        if B >= 2:
            return -(-B // 2), S, M
        ts = _round_up(-(-S // 2), 128)
        if ts >= S:
            return B, S, M
        return 1, ts, M

    # Regime C: at least one full sequence fits -> pack TB sequences per step
    # so every grid step still moves ~tile_bytes of keys (amortizes per-step
    # overhead and per-batch query/output DMAs for many-batch/short-seq).
    if seq_bytes <= tile_bytes:
        tb = min(B, max(1, tile_bytes // seq_bytes))
        return tb, S, M

    # Regime D: tile the sequence dim in multiples of 128 rows (lane-dense
    # output block, (8,128)-legal keys block); Pallas masks the partial tail.
    ts = max(128, (tile_bytes // row_bytes) // 128 * 128)
    return 1, ts, M


def scorer(query: jax.Array, keys: jax.Array, *, tile_bytes: int = 8 << 20) -> jax.Array:
    """Dot-product attention scores.

    Args:
      query: float[batch, n]
      keys:  float[batch, seq, m]   (n must equal m)
    Returns:
      scores: float[batch, seq]
    """
    B, N = query.shape
    Bk, S, M = keys.shape
    assert B == Bk and N == M, "query/keys feature dims must match"

    itemsize = jnp.dtype(keys.dtype).itemsize
    TB, TS, TM = _choose_tiles(B, S, M, itemsize, tile_bytes)
    grid = (pl.cdiv(B, TB), pl.cdiv(S, TS), pl.cdiv(M, TM))

    mask_m = (TM < M) and (M % TM != 0)
    kernel = _make_kernel(M, TM, mask_m)

    q3 = query.reshape(B, 1, M)

    cost = pl.CostEstimate(
        flops=2 * B * S * M,
        transcendentals=0,
        bytes_accessed=(B * S * M * itemsize                          # keys read
                        + B * M * jnp.dtype(query.dtype).itemsize      # query read
                        + B * S * jnp.dtype(query.dtype).itemsize),    # scores write
    )

    # 2x double-buffered keys slabs + query/output/accumulator headroom.
    vmem_limit = int(min(100 << 20, max(32 << 20, 2 * tile_bytes + (8 << 20))))

    out = pl.pallas_call(
        kernel,
        out_shape=jax.ShapeDtypeStruct((B, 1, S), query.dtype),
        grid=grid,
        in_specs=[
            # Query block: resident across the seq-tile and feature-tile axes
            # (re-fetched only when the feature tile changes).
            pl.BlockSpec((TB, 1, TM), lambda b, s, k: (b, 0, k)),
            # Keys block: ~tile_bytes slab, double-buffered by Pallas.
            pl.BlockSpec((TB, TS, TM), lambda b, s, k: (b, s, k)),
        ],
        # Output block resident across the reduction (k) axis.
        out_specs=pl.BlockSpec((TB, 1, TS), lambda b, s, k: (b, 0, s)),
        scratch_shapes=[pltpu.VMEM((TB, 1, TS), jnp.float32)],
        compiler_params=pltpu.CompilerParams(
            dimension_semantics=("parallel", "parallel", "arbitrary"),
            vmem_limit_bytes=vmem_limit,
        ),
        cost_estimate=cost,
    )(q3, keys)

    return out.reshape(B, S)


if __name__ == "__main__":
    key = jax.random.PRNGKey(0)
    kq, kk2, kq2, kk3 = jax.random.split(key, 4)

    # Small shape consistent with the module interface.
    batch, seq, hidden = 2, 8, 32
    query = jax.random.normal(kq, (batch, hidden), dtype=jnp.float32)
    keys = jax.random.normal(kk2, (batch, seq, hidden), dtype=jnp.float32)

    scores = scorer(query, keys)
    jax.block_until_ready(scores)

    ref = jnp.einsum("bn,bsn->bs", query, keys)
    assert scores.shape == (batch, seq)
    # DEFAULT MXU precision -> bf16 products (f32 accumulation): loose tolerance.
    assert jnp.allclose(scores, ref, atol=1e-1, rtol=5e-2), "mismatch vs reference"

    # Second case exercising the batch-packed / multi-tile path.
    b2, s2, h2 = 16, 256, 64
    query2 = jax.random.normal(kq2, (b2, h2), dtype=jnp.float32)
    keys2 = jax.random.normal(kk3, (b2, s2, h2), dtype=jnp.float32)
    scores2 = scorer(query2, keys2)
    jax.block_until_ready(scores2)
    ref2 = jnp.einsum("bn,bsn->bs", query2, keys2)
    assert jnp.allclose(scores2, ref2, atol=2e-1, rtol=5e-2), "mismatch vs reference (case 2)"

    print("KERNEL_OK")
</pallas_src>

<mosaic_0001>
module attributes {stable_mosaic.version = 11 : i64} {
  func.func @kernel(%arg0: i32, %arg1: i32, %arg2: i32, %arg3: memref<2x1x32xf32, #tpu.memory_space<vmem>>, %arg4: memref<2x8x32xf32, #tpu.memory_space<vmem>>, %arg5: memref<2x1x8xf32, #tpu.memory_space<vmem>>, %arg6: memref<2x1x8xf32, #tpu.memory_space<vmem>>) attributes {dimension_semantics = [#tpu.dimension_semantics<parallel>, #tpu.dimension_semantics<parallel>, #tpu.dimension_semantics<arbitrary>], iteration_bounds = array<i64: 1, 1, 1>, scalar_prefetch = 0 : i64, scratch_operands = 1 : i64, tpu.core_type = #tpu.core_type<tc>, window_params = [{transform_indices = @transform_0, window_bounds = array<i64: 2, 1, 32>}, {transform_indices = @transform_1, window_bounds = array<i64: 2, 8, 32>}, {transform_indices = @transform_2, window_bounds = array<i64: 2, 1, 8>}]} {
    %c0_i32 = arith.constant 0 : i32
    %0 = arith.cmpi eq, %arg2, %c0_i32 : i32
    %1 = arith.extui %0 : i1 to i32
    %c0_i32_0 = arith.constant 0 : i32
    %2 = arith.cmpi ne, %1, %c0_i32_0 : i32
    scf.if %2 {
      %cst_14 = arith.constant 0.000000e+00 : f32
      %12 = vector.broadcast %cst_14 : f32 to vector<2x1x8xf32>
      %c0_15 = arith.constant 0 : index
      %c0_16 = arith.constant 0 : index
      %c0_17 = arith.constant 0 : index
      %13 = vector.load %arg6[%c0_15, %c0_16, %c0_17] : memref<2x1x8xf32, #tpu.memory_space<vmem>>, vector<2x1x8xf32>
      tpu.vector_store %arg6[%c0_15, %c0_16, %c0_17], %12 {strides = array<i32>} : memref<2x1x8xf32, #tpu.memory_space<vmem>>, vector<2x1x8xf32>,
    } else {
    }
    %c0 = arith.constant 0 : index
    %c0_1 = arith.constant 0 : index
    %c0_2 = arith.constant 0 : index
    %3 = vector.load %arg3[%c0, %c0_1, %c0_2] : memref<2x1x32xf32, #tpu.memory_space<vmem>>, vector<2x1x32xf32>
    %c0_3 = arith.constant 0 : index
    %c0_4 = arith.constant 0 : index
    %c0_5 = arith.constant 0 : index
    %4 = vector.load %arg4[%c0_3, %c0_4, %c0_5] : memref<2x8x32xf32, #tpu.memory_space<vmem>>, vector<2x8x32xf32>
    %c0_6 = arith.constant 0 : index
    %c0_7 = arith.constant 0 : index
    %c0_8 = arith.constant 0 : index
    %5 = vector.load %arg6[%c0_6, %c0_7, %c0_8] : memref<2x1x8xf32, #tpu.memory_space<vmem>>, vector<2x1x8xf32>
    %cst = arith.constant dense<0.000000e+00> : vector<2x1x8xf32>
    %6 = tpu.matmul %3, %4, %cst {dimension_numbers = #tpu.dot_dimension_numbers<[2], [2], [1], [1], [0, 0, 0, 1, 1, 1], [0], [0]>} : vector<2x1x32xf32>, vector<2x8x32xf32>, vector<2x1x8xf32> -> vector<2x1x8xf32>
    %7 = arith.addf %5, %6 : vector<2x1x8xf32>
    %c0_9 = arith.constant 0 : index
    %c0_10 = arith.constant 0 : index
    %c0_11 = arith.constant 0 : index
    %8 = vector.load %arg6[%c0_9, %c0_10, %c0_11] : memref<2x1x8xf32, #tpu.memory_space<vmem>>, vector<2x1x8xf32>
    tpu.vector_store %arg6[%c0_9, %c0_10, %c0_11], %7 {strides = array<i32>} : memref<2x1x8xf32, #tpu.memory_space<vmem>>, vector<2x1x8xf32>,
    %c0_i32_12 = arith.constant 0 : i32
    %9 = arith.cmpi eq, %arg2, %c0_i32_12 : i32
    %10 = arith.extui %9 : i1 to i32
    %c0_i32_13 = arith.constant 0 : i32
    %11 = arith.cmpi ne, %10, %c0_i32_13 : i32
    scf.if %11 {
      %c0_14 = arith.constant 0 : index
      %c0_15 = arith.constant 0 : index
      %c0_16 = arith.constant 0 : index
      %12 = vector.load %arg6[%c0_14, %c0_15, %c0_16] : memref<2x1x8xf32, #tpu.memory_space<vmem>>, vector<2x1x8xf32>
      %c0_17 = arith.constant 0 : index
      %c0_18 = arith.constant 0 : index
      %c0_19 = arith.constant 0 : index
      %13 = vector.load %arg5[%c0_17, %c0_18, %c0_19] : memref<2x1x8xf32, #tpu.memory_space<vmem>>, vector<2x1x8xf32>
      tpu.vector_store %arg5[%c0_17, %c0_18, %c0_19], %12 {strides = array<i32>} : memref<2x1x8xf32, #tpu.memory_space<vmem>>, vector<2x1x8xf32>,
    } else {
    }
    return
  }
  func.func @transform_0(%arg0: i32, %arg1: i32, %arg2: i32) -> (i32, i32, i32) {
    %c0_i32 = arith.constant 0 : i32
    %c0_i32_0 = arith.constant 0 : i32
    return %arg0, %c0_i32, %arg2 : i32, i32, i32
  }
  func.func @transform_1(%arg0: i32, %arg1: i32, %arg2: i32) -> (i32, i32, i32) {
    %c0_i32 = arith.constant 0 : i32
    return %arg0, %arg1, %arg2 : i32, i32, i32
  }
  func.func @transform_2(%arg0: i32, %arg1: i32, %arg2: i32) -> (i32, i32, i32) {
    %c0_i32 = arith.constant 0 : i32
    %c0_i32_0 = arith.constant 0 : i32
    return %arg0, %c0_i32, %arg1 : i32, i32, i32
  }
}

</mosaic_0001>

<bundles_post_ra>
// kernel: tpu_custom_call.1
= control target key start
LH: loop header
LB: loop body
LE: loop exit
PB: predicated region body
PF: predicated region fallthrough
CT: control target
= control target key end

     0   :  { %7 = vsyncpa [#allocation4], 0  ;;  %s407_s0 = inlined_call_operand.hbm [shape: f32[2,1,32], index: 0, kind: input, shape index: {}]   ;;  %s408_s1 = inlined_call_operand.hbm [shape: f32[2,8,32], index: 1, kind: input, shape index: {}]   ;;  %s409_s2 = inlined_call_operand.hbm [shape: f32[2,1,8], index: 2, kind: output, shape index: {}]  }
   0x1   :  { %8 = vsyncpa [#allocation7], 0 }
   0x2   :  { %9 = vsyncpa [#allocation5], 0  ;;  %s335_s9 = smov [#allocation3]   ;;  %s263_s13 = scalar_lea.hbm %s407_s0, 32 }
   0x3   :  { %s15_s10 = sshll.u32 %s335_s9, 4  ;;  %p264_p0 = scmp.ne.s32.totalorder %s407_s0, %s263_s13  ;;  %s16_s10 = int_to_ptr.vmem [resolvable:$true] %s15_s10 }
   0x4   :  { %p267_p1 = scmp.lt.u32.totalorder %s263_s13, %s407_s0 }
   0x6   :  { %p269_p2 = pnand %p267_p1, %p264_p0 }
   0x8   :  { %272 = shalt.err (!%p269_p2)
}
   0x9   :  { %s273_s18 = scalar_lea.vmem %s16_s10, 32  ;;  %p278_p4 = scmp.lt.s32.totalorder %s16_s10, %s16_s10 }
   0xa   :  { %p274_p3 = scmp.ne.s32.totalorder %s16_s10, %s273_s18  ;;  %p279_p5 = scmp.lt.s32.totalorder %s273_s18, %s273_s18 }
   0xc   :  { %p280_p6 = por %p279_p5, %p278_p4 }
   0xe   :  { %p281_p7 = pnand %p280_p6, %p274_p3 }
  0x10   :  { %284 = shalt.err (!%p281_p7)
}
  0x11   :  { %s336_s19 = smov 16   ;;  %s337_s20 = smov 1  }
  0x12   :  { %21 = dma.hbm_to_vmem [thread:$0]  %s407_s0, 32, %s16_s10, [#allocation4], %s336_s19, %s336_s19, %s337_s20  }
  0x13   :  { %s338_s23 = smov [#allocation6]   ;;  %s285_s27 = scalar_lea.hbm %s408_s1, 256 }
  0x14   :  { %s27_s24 = sshll.u32 %s338_s23, 4  ;;  %p286_p8 = scmp.ne.s32.totalorder %s408_s1, %s285_s27  ;;  %s28_s24 = int_to_ptr.vmem [resolvable:$true] %s27_s24 }
  0x15   :  { %p289_p9 = scmp.lt.u32.totalorder %s285_s27, %s408_s1 }
  0x17   :  { %p291_p10 = pnand %p289_p9, %p286_p8 }
  0x19   :  { %294 = shalt.err (!%p291_p10)
}
  0x1a   :  { %s295_s4 = scalar_lea.vmem %s28_s24, 256  ;;  %p300_p12 = scmp.lt.s32.totalorder %s28_s24, %s28_s24 }
  0x1b   :  { %p296_p11 = scmp.ne.s32.totalorder %s28_s24, %s295_s4  ;;  %p301_p13 = scmp.lt.s32.totalorder %s295_s4, %s295_s4 }
  0x1d   :  { %p302_p0 = por %p301_p13, %p300_p12 }
  0x1f   :  { %p303_p1 = pnand %p302_p0, %p296_p11 }
  0x21   :  { %306 = shalt.err (!%p303_p1)
}
  0x22   :  { %s339_s0 = smov 128   ;;  %s340_s5 = smov 8  }
  0x23   :  { %33 = dma.hbm_to_vmem [thread:$0]  %s408_s1, 256, %s28_s24, [#allocation7], %s339_s0, %s339_s0, %s340_s5  }
  0x24   :  { %329 = dma.done.wait [#allocation4], 32  }
  0x25   :  { %330 = vsyncadd [#allocation4], 4294967264 }
  0x26   :  { %331 = dma.done.wait [#allocation7], 256  }
  0x27   :  { %332 = vsyncadd [#allocation7], 4294967040  ;;  %vm44_vm0 = vcmask 57344   ;;  %v341_v0 = vmov 0.0   ;;  %vm342_vm1 = vmmov 0   ;;  %vm53_vm2 = vcmask 261120  }
  0x28   :  { %244 = vmatprep.subr.mxu0 %v341_v0  ;;  %249 = vmatprep.subr.mxu1 %v341_v0  ;;  %45 = vst.msk [vmem:[#allocation2] sm:$0x1] %vm44_vm0, %v341_v0  ;;  %46 = vst.msk [vmem:[#allocation2 + $0x1] sm:$0x1] %vm44_vm0, %v341_v0  ;;  %v49_v1 = vld [vmem:[#allocation6] sm:$0xff]  ;;  %v50_v2 = vld [vmem:[#allocation6 + $0x8] sm:$0xff] }
  0x29   :  { %246 = vmatprep.mubr.msk.f32.mxu0 %vm342_vm1, %v341_v0  ;;  %251 = vmatprep.mubr.msk.f32.mxu1 %vm342_vm1, %v341_v0  ;;  %v47_v3 = vld [vmem:[#allocation3] sm:$0x1]  ;;  %v48_v4 = vld [vmem:[#allocation3 + $0x1] sm:$0x1]  ;;  %s343_s1 = smov [#allocation8]  }
  0x2a   :  { %245 = vmatpush3.xpose.msk.msra.mxu0 %vm53_vm2, %v49_v1  ;;  %250 = vmatpush3.xpose.msk.msra.mxu1 %vm53_vm2, %v50_v2  ;;  %s223_s8 = sshll.u32 %s343_s1, 4  ;;  %s224_s8 = int_to_ptr.vmem [resolvable:$true] %s223_s8 }
  0x2b   :  { %s307_s9 = scalar_lea.vmem %s224_s8, 32  ;;  %p312_p3 = scmp.lt.s32.totalorder %s224_s8, %s224_s8 }
  0x2c   :  { %p308_p2 = scmp.ne.s32.totalorder %s224_s8, %s307_s9  ;;  %p313_p4 = scmp.lt.s32.totalorder %s307_s9, %s307_s9 }
  0x2d   :  { %247 = vmatmul.mubr.msk.f32.vlgmr.msra.gmra.mrb[0].mxu0 %vm53_vm2, %v47_v3  ;;  %252 = vmatmul.mubr.msk.f32.vlgmr.msra.gmra.mrb[0].mxu1 %vm53_vm2, %v48_v4 }
  0x2e   :  { %p314_p5 = por %p313_p4, %p312_p3 }
  0x2f   :  { %v51_v5 = vld [vmem:[#allocation2] sm:$0x1]  ;;  %v52_v6 = vld [vmem:[#allocation2 + $0x1] sm:$0x1] }
  0x30   :  { %p315_p6 = pnand %p314_p5, %p308_p2 }
 0x100   :  { %v126_v7 = vpop.f32.mrb[0].mxu0  ;;  %v202_v8 = vpop.f32.mrb[0].mxu1 }
 0x101   :  { %v206_v9 = vadd.f32 %v126_v7, %v51_v5  ;;  %v207_v10 = vadd.f32 %v202_v8, %v52_v6  ;;  %v248_v11 = vpop.f32.mrb[1].mxu0  ;;  %v253_v12 = vpop.f32.mrb[1].mxu1 }
 0x103   :  { %209 = vst.msk [vmem:[#allocation2] sm:$0x1] %vm44_vm0, %v206_v9  ;;  %210 = vst.msk [vmem:[#allocation2 + $0x1] sm:$0x1] %vm44_vm0, %v207_v10 }
 0x10a   :  { %v214_v13 = vld [vmem:[#allocation2] sm:$0x1]  ;;  %v215_v14 = vld [vmem:[#allocation2 + $0x1] sm:$0x1] }
 0x10b   :  { %216 = vst.msk [vmem:[#allocation8] sm:$0x1] %vm44_vm0, %v214_v13  ;;  %217 = vst.msk [vmem:[#allocation8 + $0x1] sm:$0x1] %vm44_vm0, %v215_v14 }
 0x10c   :  { %318 = shalt.err (!%p315_p6)
}
 0x10d   :  { %s319_s12 = scalar_lea.hbm %s409_s2, 32 }
 0x10e   :  { %p320_p7 = scmp.ne.s32.totalorder %s409_s2, %s319_s12  ;;  %p323_p8 = scmp.lt.u32.totalorder %s319_s12, %s409_s2 }
 0x110   :  { %p325_p9 = pnand %p323_p8, %p320_p7 }
 0x112   :  { %328 = shalt.err (!%p325_p9)
}
 0x113   :  { %229 = dma.vmem_to_hbm [thread:$0]  %s224_s8, 32, %s409_s2, [#allocation5], %s336_s19, %s336_s19, %s337_s20  }
 0x114   :  { %333 = dma.done.wait [#allocation5], 32  }
 0x115   :  { %334 = vsyncadd [#allocation5], 4294967264 }
 0x116   :  { %233 = vsyncpa [#allocation4], 1 }
 0x117   :  { %234 = vsyncpa [#allocation7], 1 }
 0x118   :  { %235 = vsyncpa [#allocation5], 1 }

</bundles_post_ra>
